<compile_context>
chip_gen: v7x
topology: tpu7x:2x2x1
jax: 0.10.0
libtpu: 0.0.40
codegen_flags: <defaults>
</compile_context>

<pallas_src>
import jax
import jax.numpy as jnp
from jax.experimental import pallas as pl
from jax.experimental.pallas import tpu as pltpu

_MAX_ROW_TILE = 512      # rows per grid step for row-wise paths (2D)
_MAX_ACTION_TILE = 256   # action rows per state per grid step (3D)
_TARGET_ROWS = 512       # target Bt*At rows per grid step (3D)
_VMEM_LIMIT = 32 * 1024 * 1024


def _round_up(x, m):
    return (x + m - 1) // m * m


def _pick_tile(n, max_tile):
    """Multiple-of-8 tile <= ~max_tile that minimizes padding of n rows."""
    n8 = _round_up(max(int(n), 1), 8)
    if n8 <= max_tile:
        return n8
    steps = -(-n8 // max_tile)
    return _round_up(-(-n8 // steps), 8)


# ----------------------------- Pallas kernels -------------------------------

def _layers23(h, w2_ref, b2_ref, w3_ref, b3_ref):
    """Hidden layer 2 (+ReLU) and the 1-wide output layer on (rows, h0) f32."""
    h = jnp.maximum(
        jnp.dot(h, w2_ref[...], preferred_element_type=jnp.float32) + b2_ref[...],
        0.0)
    return jnp.dot(h, w3_ref[...], preferred_element_type=jnp.float32) + b3_ref[...]


def _mlp_rows_kernel(x_ref, w1_ref, b1_ref, w2_ref, b2_ref, w3_ref, b3_ref, o_ref):
    """forward(x): x is already the concatenated (tile, state+action) rows."""
    h = jnp.dot(x_ref[...], w1_ref[...], preferred_element_type=jnp.float32)
    h = jnp.maximum(h + b1_ref[...], 0.0)
    o_ref[...] = _layers23(h, w2_ref, b2_ref, w3_ref, b3_ref)   # (tile, 1)


def _mlp_split2d_kernel(s_ref, a_ref, w1s_ref, w1a_ref, b1_ref,
                        w2_ref, b2_ref, w3_ref, b3_ref, o_ref):
    """2D get_q_values: state/action rows fed separately (no concat in HBM)."""
    h = (jnp.dot(s_ref[...], w1s_ref[...], preferred_element_type=jnp.float32)
         + jnp.dot(a_ref[...], w1a_ref[...], preferred_element_type=jnp.float32))
    h = jnp.maximum(h + b1_ref[...], 0.0)
    o_ref[...] = _layers23(h, w2_ref, b2_ref, w3_ref, b3_ref)   # (tile, 1)


def _mlp_split3d_kernel(s_ref, a_ref, w1s_ref, w1a_ref, b1_ref,
                        w2_ref, b2_ref, w3_ref, b3_ref, o_ref):
    """3D get_q_values: Bt state rows x At actions each per grid step.

    The state half of layer 1 is computed once per state row and broadcast
    over its action tile on-chip; repeated state never hits HBM. All reshapes
    keep the minor dim fixed (layout-preserving since At % 8 == 0).
    """
    bt, at, a_dim = a_ref.shape
    h0 = w1s_ref.shape[1]
    hs = jnp.dot(s_ref[...], w1s_ref[...],
                 preferred_element_type=jnp.float32)               # (bt, h0)
    a = a_ref[...].reshape(bt * at, a_dim)
    ha = jnp.dot(a, w1a_ref[...],
                 preferred_element_type=jnp.float32)               # (bt*at, h0)
    h = ha.reshape(bt, at, h0) + hs[:, None, :] + b1_ref[...]
    h = jnp.maximum(h, 0.0).reshape(bt * at, h0)
    q = _layers23(h, w2_ref, b2_ref, w3_ref, b3_ref)               # (bt*at, 1)
    o_ref[...] = q.reshape(bt, at, 1)


# ------------------------------- wrappers -----------------------------------

def _const2d(w):
    return pl.BlockSpec(tuple(w.shape), lambda *_: (0, 0))


@jax.jit
def _forward_rows(x, w1, b1, w2, b2, w3, b3):
    """x: (B, in_dim) f32 -> (B, 1) f32."""
    B, in_dim = x.shape
    tile = _pick_tile(B, _MAX_ROW_TILE)
    B_pad = _round_up(B, tile)
    if B_pad != B:
        x = jnp.pad(x, ((0, B_pad - B), (0, 0)))
    out = pl.pallas_call(
        _mlp_rows_kernel,
        out_shape=jax.ShapeDtypeStruct((B_pad, 1), jnp.float32),
        grid_spec=pltpu.PrefetchScalarGridSpec(
            num_scalar_prefetch=0,
            grid=(B_pad // tile,),
            in_specs=[
                pl.BlockSpec((tile, in_dim), lambda i: (i, 0)),   # x tile (unpadded width)
                _const2d(w1), _const2d(b1),                       # resident weights
                _const2d(w2), _const2d(b2),
                _const2d(w3), _const2d(b3),
            ],
            out_specs=pl.BlockSpec((tile, 1), lambda i: (i, 0)),  # narrow Q output
        ),
        compiler_params=pltpu.CompilerParams(
            dimension_semantics=("parallel",),
            vmem_limit_bytes=_VMEM_LIMIT),
    )(x, w1, b1, w2, b2, w3, b3)
    if B_pad != B:
        out = out[:B]
    return out


@jax.jit
def _q_values_2d(state, action, w1s, w1a, b1, w2, b2, w3, b3):
    """state: (B, S), action: (B, A_dim) -> (B,) Q-values."""
    B, s_dim = state.shape
    _, a_dim = action.shape
    tile = _pick_tile(B, _MAX_ROW_TILE)
    B_pad = _round_up(B, tile)
    if B_pad != B:
        state = jnp.pad(state, ((0, B_pad - B), (0, 0)))
        action = jnp.pad(action, ((0, B_pad - B), (0, 0)))
    out = pl.pallas_call(
        _mlp_split2d_kernel,
        out_shape=jax.ShapeDtypeStruct((B_pad, 1), jnp.float32),
        grid_spec=pltpu.PrefetchScalarGridSpec(
            num_scalar_prefetch=0,
            grid=(B_pad // tile,),
            in_specs=[
                pl.BlockSpec((tile, s_dim), lambda i: (i, 0)),
                pl.BlockSpec((tile, a_dim), lambda i: (i, 0)),
                _const2d(w1s), _const2d(w1a), _const2d(b1),
                _const2d(w2), _const2d(b2),
                _const2d(w3), _const2d(b3),
            ],
            out_specs=pl.BlockSpec((tile, 1), lambda i: (i, 0)),
        ),
        compiler_params=pltpu.CompilerParams(
            dimension_semantics=("parallel",),
            vmem_limit_bytes=_VMEM_LIMIT),
    )(state, action, w1s, w1a, b1, w2, b2, w3, b3)
    return out.reshape(-1)[:B]


@jax.jit
def _q_values_3d(state, actions, w1s, w1a, b1, w2, b2, w3, b3):
    """state: (B, S), actions: (B, A, A_dim) -> (B, A) Q-values."""
    B, s_dim = state.shape
    _, A, a_dim = actions.shape
    at = _pick_tile(A, _MAX_ACTION_TILE)
    bt = _pick_tile(B, _round_up(max(8, _TARGET_ROWS // at), 8))
    A_pad = _round_up(A, at)
    B_pad = _round_up(B, bt)
    if B_pad != B or A_pad != A:
        state = jnp.pad(state, ((0, B_pad - B), (0, 0)))
        actions = jnp.pad(actions, ((0, B_pad - B), (0, A_pad - A), (0, 0)))
    out = pl.pallas_call(
        _mlp_split3d_kernel,
        out_shape=jax.ShapeDtypeStruct((B_pad, A_pad, 1), jnp.float32),
        grid_spec=pltpu.PrefetchScalarGridSpec(
            num_scalar_prefetch=0,
            grid=(B_pad // bt, A_pad // at),
            in_specs=[
                pl.BlockSpec((bt, s_dim), lambda b, a: (b, 0)),        # state rows
                pl.BlockSpec((bt, at, a_dim), lambda b, a: (b, a, 0)), # action block
                _const2d(w1s), _const2d(w1a), _const2d(b1),
                _const2d(w2), _const2d(b2),
                _const2d(w3), _const2d(b3),
            ],
            out_specs=pl.BlockSpec((bt, at, 1), lambda b, a: (b, a, 0)),
        ),
        compiler_params=pltpu.CompilerParams(
            dimension_semantics=("parallel", "parallel"),
            vmem_limit_bytes=_VMEM_LIMIT),
    )(state, actions, w1s, w1a, b1, w2, b2, w3, b3)
    return out.reshape(B_pad, A_pad)[:B, :A]


# --------------------------- Module-level wrapper ---------------------------

class VanillaQValueNetworkPallas:
    """JAX/Pallas port of pearl's VanillaQValueNetwork (use_layer_norm=False)."""

    def __init__(self, state_dim, action_dim, hidden_dims, key):
        assert len(hidden_dims) == 2, "this port uses exactly 2 hidden layers"
        self._state_dim = state_dim
        self._action_dim = action_dim
        in_dim = state_dim + action_dim
        dims = [in_dim] + list(hidden_dims) + [1]

        # Same init scheme as torch.nn.Linear: U(-1/sqrt(fan_in), 1/sqrt(fan_in)).
        keys = jax.random.split(key, 2 * (len(dims) - 1))
        params = {}
        for li in range(len(dims) - 1):
            fan_in, fan_out = dims[li], dims[li + 1]
            bound = 1.0 / float(jnp.sqrt(jnp.float32(fan_in)))
            params[f"w{li + 1}"] = jax.random.uniform(
                keys[2 * li], (fan_in, fan_out), minval=-bound, maxval=bound,
                dtype=jnp.float32)
            params[f"b{li + 1}"] = jax.random.uniform(
                keys[2 * li + 1], (fan_out,), minval=-bound, maxval=bound,
                dtype=jnp.float32)
        self.params = params

        # Cache kernel-ready views ONCE (no feature padding, no dtype casts):
        #  - full W1 for forward(x) with pre-concatenated rows,
        #  - split W1 halves so get_q_values never materializes a concat,
        #  - biases as (1, h) rows for in-kernel broadcast.
        self._w1 = params["w1"]
        self._w1s = params["w1"][:state_dim]
        self._w1a = params["w1"][state_dim:]
        self._b1 = params["b1"].reshape(1, -1)
        self._w2 = params["w2"]
        self._b2 = params["b2"].reshape(1, -1)
        self._w3 = params["w3"]
        self._b3 = params["b3"].reshape(1, -1)

    @property
    def state_dim(self):
        return self._state_dim

    @property
    def action_dim(self):
        return self._action_dim

    def forward(self, x):
        assert x.ndim == 2 and x.shape[-1] == self._state_dim + self._action_dim
        return _forward_rows(x, self._w1, self._b1, self._w2, self._b2,
                             self._w3, self._b3)

    def get_q_values(self, state_batch, action_batch):
        assert action_batch.ndim in (2, 3)
        if action_batch.ndim == 2:
            return _q_values_2d(state_batch, action_batch,
                                self._w1s, self._w1a, self._b1,
                                self._w2, self._b2, self._w3, self._b3)
        return _q_values_3d(state_batch, action_batch,
                            self._w1s, self._w1a, self._b1,
                            self._w2, self._b2, self._w3, self._b3)


# ----------------------------- reference (JAX) ------------------------------

def _mlp_ref(x, p):
    h = jnp.maximum(x @ p["w1"] + p["b1"], 0.0)
    h = jnp.maximum(h @ p["w2"] + p["b2"], 0.0)
    return h @ p["w3"] + p["b3"]


if __name__ == "__main__":
    key = jax.random.PRNGKey(0)
    k_net, k_s, k_a2, k_a3, k_x = jax.random.split(key, 5)

    state_dim, action_dim = 8, 4
    hidden_dims = [32, 32]
    batch, num_actions = 2, 5

    net = VanillaQValueNetworkPallas(state_dim, action_dim, hidden_dims, k_net)

    state = jax.random.normal(k_s, (batch, state_dim), dtype=jnp.float32)
    action_2d = jax.random.normal(k_a2, (batch, action_dim), dtype=jnp.float32)
    action_3d = jax.random.normal(k_a3, (batch, num_actions, action_dim),
                                  dtype=jnp.float32)

    # 2D action batch -> (batch,)
    q2 = jax.block_until_ready(net.get_q_values(state, action_2d))
    assert q2.shape == (batch,)

    # 3D action batch -> (batch, num_actions)
    q3 = jax.block_until_ready(net.get_q_values(state, action_3d))
    assert q3.shape == (batch, num_actions)

    # forward() on pre-concatenated rows -> (batch, 1)
    x2 = jnp.concatenate([state, action_2d], axis=-1)
    f2 = jax.block_until_ready(net.forward(x2))
    assert f2.shape == (batch, 1)

    # Multi-tile grid check (B=600 -> 2 steps of 304 rows).
    xb = jax.random.normal(k_x, (600, state_dim + action_dim), dtype=jnp.float32)
    fb = jax.block_until_ready(net.forward(xb))
    assert fb.shape == (600, 1)

    # Numerical checks vs. plain-JAX f32 reference.
    ref2 = _mlp_ref(x2, net.params).reshape(-1)
    state_rep = jnp.repeat(state[:, None, :], num_actions, axis=1)
    x3 = jnp.concatenate([state_rep, action_3d], axis=-1).reshape(
        -1, state_dim + action_dim)
    ref3 = _mlp_ref(x3, net.params).reshape(batch, num_actions)
    refb = _mlp_ref(xb, net.params)

    assert jnp.allclose(q2, ref2, atol=2e-2, rtol=2e-2), (q2, ref2)
    assert jnp.allclose(f2, _mlp_ref(x2, net.params), atol=2e-2, rtol=2e-2)
    assert jnp.allclose(q3, ref3, atol=2e-2, rtol=2e-2), (q3, ref3)
    assert jnp.allclose(fb, refb, atol=2e-2, rtol=2e-2)

    print("KERNEL_OK")
</pallas_src>

<mosaic_0001>
module attributes {stable_mosaic.version = 11 : i64} {
  func.func @_mlp_split2d_kernel(%arg0: i32, %arg1: memref<8x8xf32, #tpu.memory_space<vmem>>, %arg2: memref<8x4xf32, #tpu.memory_space<vmem>>, %arg3: memref<8x32xf32, #tpu.memory_space<vmem>>, %arg4: memref<4x32xf32, #tpu.memory_space<vmem>>, %arg5: memref<1x32xf32, #tpu.memory_space<vmem>>, %arg6: memref<32x32xf32, #tpu.memory_space<vmem>>, %arg7: memref<1x32xf32, #tpu.memory_space<vmem>>, %arg8: memref<32x1xf32, #tpu.memory_space<vmem>>, %arg9: memref<1x1xf32, #tpu.memory_space<vmem>>, %arg10: memref<8x1xf32, #tpu.memory_space<vmem>>) attributes {dimension_semantics = [#tpu.dimension_semantics<parallel>], iteration_bounds = array<i64: 1>, scalar_prefetch = 0 : i64, scratch_operands = 0 : i64, tpu.core_type = #tpu.core_type<tc>, window_params = [{transform_indices = @transform_0, window_bounds = array<i64: 8, 8>}, {transform_indices = @transform_1, window_bounds = array<i64: 8, 4>}, {pipeline_mode = #tpu.pipeline_mode<synchronous>, transform_indices = @transform_2, window_bounds = array<i64: 8, 32>}, {pipeline_mode = #tpu.pipeline_mode<synchronous>, transform_indices = @transform_3, window_bounds = array<i64: 4, 32>}, {pipeline_mode = #tpu.pipeline_mode<synchronous>, transform_indices = @transform_4, window_bounds = array<i64: 1, 32>}, {pipeline_mode = #tpu.pipeline_mode<synchronous>, transform_indices = @transform_5, window_bounds = array<i64: 32, 32>}, {pipeline_mode = #tpu.pipeline_mode<synchronous>, transform_indices = @transform_6, window_bounds = array<i64: 1, 32>}, {pipeline_mode = #tpu.pipeline_mode<synchronous>, transform_indices = @transform_7, window_bounds = array<i64: 32, 1>}, {pipeline_mode = #tpu.pipeline_mode<synchronous>, transform_indices = @transform_8, window_bounds = array<i64: 1, 1>}, {transform_indices = @transform_9, window_bounds = array<i64: 8, 1>}]} {
    %c0 = arith.constant 0 : index
    %c0_0 = arith.constant 0 : index
    %0 = vector.load %arg1[%c0, %c0_0] : memref<8x8xf32, #tpu.memory_space<vmem>>, vector<8x8xf32>
    %c0_1 = arith.constant 0 : index
    %c0_2 = arith.constant 0 : index
    %1 = vector.load %arg3[%c0_1, %c0_2] : memref<8x32xf32, #tpu.memory_space<vmem>>, vector<8x32xf32>
    %cst = arith.constant dense<0.000000e+00> : vector<8x32xf32>
    %2 = tpu.matmul %0, %1, %cst {dimension_numbers = #tpu.dot_dimension_numbers<[1], [0], [0], [1], [0, 0, 1, 1], [], []>} : vector<8x8xf32>, vector<8x32xf32>, vector<8x32xf32> -> vector<8x32xf32>
    %c0_3 = arith.constant 0 : index
    %c0_4 = arith.constant 0 : index
    %3 = vector.load %arg2[%c0_3, %c0_4] : memref<8x4xf32, #tpu.memory_space<vmem>>, vector<8x4xf32>
    %c0_5 = arith.constant 0 : index
    %c0_6 = arith.constant 0 : index
    %4 = vector.load %arg4[%c0_5, %c0_6] : memref<4x32xf32, #tpu.memory_space<vmem>>, vector<4x32xf32>
    %cst_7 = arith.constant dense<0.000000e+00> : vector<8x32xf32>
    %5 = tpu.matmul %3, %4, %cst_7 {dimension_numbers = #tpu.dot_dimension_numbers<[1], [0], [0], [1], [0, 0, 1, 1], [], []>} : vector<8x4xf32>, vector<4x32xf32>, vector<8x32xf32> -> vector<8x32xf32>
    %6 = arith.addf %2, %5 : vector<8x32xf32>
    %c0_8 = arith.constant 0 : index
    %c0_9 = arith.constant 0 : index
    %7 = vector.load %arg5[%c0_8, %c0_9] : memref<1x32xf32, #tpu.memory_space<vmem>>, vector<1x32xf32>
    %8 = vector.broadcast %7 : vector<1x32xf32> to vector<8x32xf32>
    %9 = arith.addf %6, %8 : vector<8x32xf32>
    %cst_10 = arith.constant 0.000000e+00 : f32
    %10 = vector.broadcast %cst_10 : f32 to vector<8x32xf32>
    %11 = arith.maximumf %9, %10 : vector<8x32xf32>
    %c0_11 = arith.constant 0 : index
    %c0_12 = arith.constant 0 : index
    %12 = vector.load %arg6[%c0_11, %c0_12] : memref<32x32xf32, #tpu.memory_space<vmem>>, vector<32x32xf32>
    %cst_13 = arith.constant dense<0.000000e+00> : vector<8x32xf32>
    %13 = tpu.matmul %11, %12, %cst_13 {dimension_numbers = #tpu.dot_dimension_numbers<[1], [0], [0], [1], [0, 0, 1, 1], [], []>} : vector<8x32xf32>, vector<32x32xf32>, vector<8x32xf32> -> vector<8x32xf32>
    %c0_14 = arith.constant 0 : index
    %c0_15 = arith.constant 0 : index
    %14 = vector.load %arg7[%c0_14, %c0_15] : memref<1x32xf32, #tpu.memory_space<vmem>>, vector<1x32xf32>
    %15 = vector.broadcast %14 : vector<1x32xf32> to vector<8x32xf32>
    %16 = arith.addf %13, %15 : vector<8x32xf32>
    %cst_16 = arith.constant 0.000000e+00 : f32
    %17 = vector.broadcast %cst_16 : f32 to vector<8x32xf32>
    %18 = arith.maximumf %16, %17 : vector<8x32xf32>
    %c0_17 = arith.constant 0 : index
    %c0_18 = arith.constant 0 : index
    %19 = vector.load %arg8[%c0_17, %c0_18] : memref<32x1xf32, #tpu.memory_space<vmem>>, vector<32x1xf32>
    %cst_19 = arith.constant dense<0.000000e+00> : vector<8x1xf32>
    %20 = tpu.matmul %18, %19, %cst_19 {dimension_numbers = #tpu.dot_dimension_numbers<[1], [0], [0], [1], [0, 0, 1, 1], [], []>} : vector<8x32xf32>, vector<32x1xf32>, vector<8x1xf32> -> vector<8x1xf32>
    %c0_20 = arith.constant 0 : index
    %c0_21 = arith.constant 0 : index
    %21 = vector.load %arg9[%c0_20, %c0_21] : memref<1x1xf32, #tpu.memory_space<vmem>>, vector<1x1xf32>
    %22 = vector.broadcast %21 : vector<1x1xf32> to vector<8x1xf32>
    %23 = arith.addf %20, %22 : vector<8x1xf32>
    %c0_22 = arith.constant 0 : index
    %c0_23 = arith.constant 0 : index
    %24 = vector.load %arg10[%c0_22, %c0_23] : memref<8x1xf32, #tpu.memory_space<vmem>>, vector<8x1xf32>
    tpu.vector_store %arg10[%c0_22, %c0_23], %23 {strides = array<i32>} : memref<8x1xf32, #tpu.memory_space<vmem>>, vector<8x1xf32>,
    return
  }
  func.func @transform_0(%arg0: i32) -> (i32, i32) {
    %c0_i32 = arith.constant 0 : i32
    %c0_i32_0 = arith.constant 0 : i32
    return %arg0, %c0_i32 : i32, i32
  }
  func.func @transform_1(%arg0: i32) -> (i32, i32) {
    %c0_i32 = arith.constant 0 : i32
    %c0_i32_0 = arith.constant 0 : i32
    return %arg0, %c0_i32 : i32, i32
  }
  func.func @transform_2(%arg0: i32) -> (i32, i32) {
    %c0_i32 = arith.constant 0 : i32
    %c0_i32_0 = arith.constant 0 : i32
    %c0_i32_1 = arith.constant 0 : i32
    return %c0_i32, %c0_i32_0 : i32, i32
  }
  func.func @transform_3(%arg0: i32) -> (i32, i32) {
    %c0_i32 = arith.constant 0 : i32
    %c0_i32_0 = arith.constant 0 : i32
    %c0_i32_1 = arith.constant 0 : i32
    return %c0_i32, %c0_i32_0 : i32, i32
  }
  func.func @transform_4(%arg0: i32) -> (i32, i32) {
    %c0_i32 = arith.constant 0 : i32
    %c0_i32_0 = arith.constant 0 : i32
    %c0_i32_1 = arith.constant 0 : i32
    return %c0_i32, %c0_i32_0 : i32, i32
  }
  func.func @transform_5(%arg0: i32) -> (i32, i32) {
    %c0_i32 = arith.constant 0 : i32
    %c0_i32_0 = arith.constant 0 : i32
    %c0_i32_1 = arith.constant 0 : i32
    return %c0_i32, %c0_i32_0 : i32, i32
  }
  func.func @transform_6(%arg0: i32) -> (i32, i32) {
    %c0_i32 = arith.constant 0 : i32
    %c0_i32_0 = arith.constant 0 : i32
    %c0_i32_1 = arith.constant 0 : i32
    return %c0_i32, %c0_i32_0 : i32, i32
  }
  func.func @transform_7(%arg0: i32) -> (i32, i32) {
    %c0_i32 = arith.constant 0 : i32
    %c0_i32_0 = arith.constant 0 : i32
    %c0_i32_1 = arith.constant 0 : i32
    return %c0_i32, %c0_i32_0 : i32, i32
  }
  func.func @transform_8(%arg0: i32) -> (i32, i32) {
    %c0_i32 = arith.constant 0 : i32
    %c0_i32_0 = arith.constant 0 : i32
    %c0_i32_1 = arith.constant 0 : i32
    return %c0_i32, %c0_i32_0 : i32, i32
  }
  func.func @transform_9(%arg0: i32) -> (i32, i32) {
    %c0_i32 = arith.constant 0 : i32
    %c0_i32_0 = arith.constant 0 : i32
    return %arg0, %c0_i32 : i32, i32
  }
}

</mosaic_0001>

<bundles_post_ra>
// kernel: _q_values_2d.1
= control target key start
LH: loop header
LB: loop body
LE: loop exit
PB: predicated region body
PF: predicated region fallthrough
CT: control target
= control target key end

     0   :  { %vm42_vm0 = vcmask 1043456   ;;  %v444_v0 = vmov 0.0   ;;  %vm38_vm1 = vcmask 31744   ;;  %vm116_vm2 = vcmask 64512   ;;  %s547_s3 = inlined_call_operand.vmem [shape: f32[4,32], index: 3, kind: input, shape index: {}]   ;;  %s548_s2 = inlined_call_operand.vmem [shape: f32[8,32], index: 2, kind: input, shape index: {}]   ;;  %s549_s1 = inlined_call_operand.vmem [shape: f32[8,4], index: 1, kind: input, shape index: {}]   ;;  %s550_s0 = inlined_call_operand.vmem [shape: f32[8,8], index: 0, kind: input, shape index: {}]   ;;  %s551_s5 = inlined_call_operand.vmem [shape: f32[32,32], index: 5, kind: input, shape index: {}]   ;;  %s552_s7 = inlined_call_operand.vmem [shape: f32[32,1], index: 7, kind: input, shape index: {}]   ;;  %s553_s4 = inlined_call_operand.vmem [shape: f32[1,32], index: 4, kind: input, shape index: {}]   ;;  %s554_s8 = inlined_call_operand.<no memory space> [shape: f32[1,1], index: 8, kind: input, shape index: {}]   ;;  %s555_s6 = inlined_call_operand.vmem [shape: f32[1,32], index: 6, kind: input, shape index: {}]   ;;  %s556_s9 = inlined_call_operand.vmem [shape: f32[8,1], index: 9, kind: output, shape index: {}]  }
   0x1   :  { %397 = vmatprep.subr.mxu0 %v444_v0  ;;  %402 = vmatprep.subr.mxu1 %v444_v0  ;;  %v37_v1 = vld [vmem:[%s547_s3] sm:$0xf]  ;;  %vm445_vm3 = vmmov 0   ;;  %v446_v5 = vmov 0.0|0.0   ;;  %v200_v7 = vld [vmem:[%s551_s5 + $0x8] sm:$0xff]  ;;  %v201_v9 = vld [vmem:[%s551_s5 + $0x10] sm:$0xff]  ;;  %v14_v26 = vstv %s554_s8 }
   0x2   :  { %v35_v2 = vld [vmem:[%s548_s2] sm:$0xff]  ;;  %398 = vmatpush3.msk.msra.mxu0 %vm42_vm0, %v37_v1  ;;  %399 = vmatprep.mubr.msk.f32.mxu0 %vm445_vm3, %v444_v0  ;;  %v202_v10 = vld [vmem:[%s551_s5 + $0x18] sm:$0xff]  ;;  %v286_v13 = vld [vmem:[%s552_s7 + $0x8] sm:$0xff]  ;;  %vm210_vm4 = vcmask 261120   ;;  %15 = vst [vmem:[#allocation2] sm:$0x1] %v14_v26 }
   0x3   :  { %v36_v3 = vld [vmem:[%s549_s1] sm:$0xff]  ;;  %403 = vmatpush3.msra.mxu1 %v35_v2  ;;  %404 = vmatprep.mubr.msk.f32.mxu1 %vm445_vm3, %v444_v0  ;;  %v433_v11 = vpack.c.bf16 %v202_v10, %v201_v9  ;;  %v287_v23 = vld [vmem:[%s552_s7 + $0x10] sm:$0xff]  ;;  %v288_v24 = vld [vmem:[%s552_s7 + $0x18] sm:$0xff]  ;;  %vm369_vm5 = vcmask 7168  }
   0x4   :  { %v34_v4 = vld [vmem:[%s550_s0] sm:$0xff]  ;;  %400 = vmatmul.mubr.msk.f32.vlgmr.msra.gmra.mrb[0].mxu0 %vm38_vm1, %v36_v3  ;;  %429 = vmatprep.subr.bf16.mxu0 %v446_v5  ;;  %v439_v25 = vpack.c.bf16 %v288_v24, %v287_v23 }
   0x5   :  { %405 = vmatmul.mubr.msk.f32.vlgmr.msra.gmra.mrb[0].mxu1 %vm116_vm2, %v34_v4  ;;  %415 = vmatprep.mubr.msk.f32.mxu0 %vm445_vm3, %v444_v0  ;;  %v199_v6 = vld [vmem:[%s551_s5] sm:$0xff] }
   0x6   :  { %435 = vmatprep.subr.bf16.mxu1 %v446_v5  ;;  %426 = vmatprep.mubr.msk.f32.mxu1 %vm445_vm3, %v444_v0  ;;  %v430_v8 = vpack.c.bf16 %v200_v7, %v199_v6  ;;  %v285_v12 = vld [vmem:[%s552_s7] sm:$0xff] }
   0x7   :  { %v436_v14 = vpack.c.bf16 %v286_v13, %v285_v12  ;;  %v378_v17 = vld [vmem:[%s553_s4] ss:$0 sm:$0xff] }
   0x8   :  { %431 = vmatpush3.bf16.msra.mxu0 %v430_v8  ;;  %v379_v27 = vld [vmem:[%s555_s6] ss:$0 sm:$0xff] }
   0x9   :  { %432 = vmatprep.subr.bf16.mxu0 %v446_v5  ;;  %437 = vmatpush3.bf16.msra.mxu1 %v436_v14  ;;  %v381_v32 = vld [vmem:[#allocation2] ss:$0 sm:$0xff] }
   0xa   :  { %438 = vmatprep.subr.bf16.mxu1 %v446_v5 }
   0xc   :  { %434 = vmatpush3.bf16.msra.mxu0 %v433_v11 }
   0xd   :  { %440 = vmatpush3.bf16.msra.mxu1 %v439_v25 }
  0xd7   :  { %v112_v15 = vpop.f32.mrb[0].mxu0 }
  0xd8   :  { %v186_v16 = vpop.f32.mrb[0].mxu1  ;;  %v401_v19 = vpop.f32.mrb[1].mxu0 }
  0xd9   :  { %v187_v18 = vadd.f32 %v186_v16, %v112_v15  ;;  %v406_v20 = vpop.f32.mrb[1].mxu1 }
  0xdb   :  { %v197_v21 = vadd.f32 %v378_v17, %v187_v18 }
  0xdd   :  { %v198_v22 = vmax.f32 %v197_v21, 0.0 }
  0xdf   :  { %416 = vmatmul.mubr.msk.f32.vlgmr.msra.gmra.mrb[2].mxu0 %vm210_vm4, %v198_v22 }
 0x1b2   :  { %v280_v28 = vpop.f32.mrb[2].mxu0 }
 0x1b3   :  { %v281_v29 = vadd.f32 %v379_v27, %v280_v28  ;;  %v417_v30 = vpop.f32.mrb[3].mxu0 }
 0x1b5   :  { %v284_v31 = vmax.f32 %v281_v29, 0.0 }
 0x1b7   :  { %427 = vmatmul.mubr.msk.f32.vlgmr.msra.gmra.mrb[2].mxu1 %vm210_vm4, %v284_v31 }
 0x28a   :  { %v365_v33 = vpop.f32.mrb[2].mxu1 }
 0x28b   :  { %v366_v34 = vadd.f32 %v381_v32, %v365_v33  ;;  %v428_v35 = vpop.f32.mrb[3].mxu1 }
 0x28d   :  { %370 = vst.msk [vmem:[%s556_s9] sm:$0xff] %vm369_vm5, %v366_v34 }

</bundles_post_ra>
